<compile_context>
chip_gen: v6e
topology: v6e:2x2x1
jax: 0.10.0
libtpu: 0.0.40
codegen_flags: <defaults>
</compile_context>

<pallas_src>
import numpy as np
import jax
import jax.numpy as jnp
from jax.experimental import pallas as pl
from jax.experimental.pallas import tpu as pltpu


def make_spatial_gate_kernel(H, W, C, Cr, CP, b_tile, dil=4):
    HW = H * W
    L = b_tile * HW
    offsets = [((ky - 1) * dil, (kx - 1) * dil) for ky in range(3) for kx in range(3)]

    def kernel(x_ref, m_ref, w1_ref, wd_ref, b_ref, o_ref, xs_ref, tap_ref):
        # 1) repack the batch tile into a channel-major lane-batched slab (C, L):
        #    b_tile aligned (C, HW) copies at static 128-multiple lane offsets.
        for b in range(b_tile):
            xs_ref[:, b * HW:(b + 1) * HW] = x_ref[b].astype(jnp.float32)

        b1 = b_ref[:, 0:1]
        b2 = b_ref[:, 1:2]
        b3 = b_ref[:, 2:3]

        # 2) 1x1 reduce conv (+folded BN) + ReLU: one wide MXU matmul over L lanes.
        h = jnp.dot(w1_ref[...], xs_ref[...], preferred_element_type=jnp.float32)
        h = jnp.maximum(h + b1, 0.0)                      # (CP, L); rows >= Cr are 0

        # 3) dilated 3x3 convs (+folded BN) + ReLU.  Taps built once per grid step:
        #    lane roll (XLU) + precomputed boundary mask, stored sublane-aligned into
        #    the (9*CP, L) scratch, then contracted with a single K = 9*CP matmul.
        def dilated(hin, wd):
            for t, (dy, dx) in enumerate(offsets):
                s = dy * W + dx
                if s == 0:
                    tap_ref[t * CP:(t + 1) * CP, :] = hin          # center: always valid
                else:
                    rolled = pltpu.roll(hin, (-s) % L, axis=1)     # rolled[:, j] = hin[:, j+s]
                    tap_ref[t * CP:(t + 1) * CP, :] = rolled * m_ref[t:t + 1, :]
            return jnp.dot(wd, tap_ref[...], preferred_element_type=jnp.float32)

        h = jnp.maximum(dilated(h, wd_ref[0:CP, :]) + b2, 0.0)
        h = jnp.maximum(dilated(h, wd_ref[CP:2 * CP, :]) + b3, 0.0)

        # 4) final 1x1 conv (Cr -> 1) on the VPU; an M=1, K=Cr matmul is pure MXU
        #    push/pop latency for a few hundred FLOPs.
        g = b_ref[0:1, 3:4] + h[0:1, :] * b_ref[0:1, 4:5]
        for ci in range(1, Cr):
            g = g + h[ci:ci + 1, :] * b_ref[ci:ci + 1, 4:5]        # (1, L)

        # 5) expand_as: broadcast the single-channel gate over all C channels.
        for b in range(b_tile):
            o_ref[b] = jnp.broadcast_to(g[:, b * HW:(b + 1) * HW], (C, HW)).astype(o_ref.dtype)

    return kernel


def _per_image_vmem_bytes(C, CP, HW):
    # in (x2 buf) + out (x2 buf) + slab + tap scratch + live h values + masks, f32.
    return (2 * C + 2 * C + C + 9 * CP + 3 * CP + 9) * HW * 4


def _pick_b_tile(N, C, CP, HW):
    # Largest divisor of N that fits the VMEM budget and keeps >= 2 grid programs
    # when possible (so both v7x TensorCores get work); hard cap 32 bounds the
    # statically unrolled copy loops.
    per_image = _per_image_vmem_bytes(C, CP, HW)
    budget = 10 * 1024 * 1024
    cap = int(max(1, min(32, budget // per_image)))
    divisors = [d for d in range(1, N + 1) if N % d == 0 and d <= cap]
    multi = [d for d in divisors if N // d >= 2]
    return max(multi) if multi else max(divisors)


def _tap_masks(H, W, b_tile, dil=4):
    """Precomputed tap-validity masks, tiled over the batch tile: (9, b_tile*H*W)."""
    HW = H * W
    idx = np.arange(HW)
    row, col = idx // W, idx % W
    masks = []
    for ky in range(3):
        for kx in range(3):
            dy, dx = (ky - 1) * dil, (kx - 1) * dil
            ok = (row + dy >= 0) & (row + dy < H) & (col + dx >= 0) & (col + dx < W)
            masks.append(ok.astype(np.float32))
    m = np.stack(masks, axis=0)                      # (9, HW)
    return jnp.asarray(np.tile(m, (1, b_tile)))      # (9, b_tile*HW)


def spatial_gate_forward(x_nchw, kparams, *, cr, b_tile=None):
    N, C, H, W = x_nchw.shape
    HW = H * W
    CP = kparams['w1'].shape[0]
    x = x_nchw.reshape(N, C, HW)                     # free reshape, no transpose

    if b_tile is None:
        b_tile = _pick_b_tile(N, C, CP, HW)
    assert N % b_tile == 0, (N, b_tile)
    L = b_tile * HW
    grid = (N // b_tile,)

    masks = _tap_masks(H, W, b_tile, dil=4)
    kernel = make_spatial_gate_kernel(H, W, C, cr, CP, b_tile, dil=4)

    footprint = _per_image_vmem_bytes(C, CP, HW) * b_tile + 2 * 1024 * 1024
    vmem_limit = int(min(32 * 1024 * 1024, max(16 * 1024 * 1024, footprint)))

    params = [masks, kparams['w1'], kparams['wd'], kparams['bias']]
    in_specs = [pl.BlockSpec((b_tile, C, HW), lambda b: (b, 0, 0))]
    for p in params:
        in_specs.append(pl.BlockSpec(p.shape, lambda b: (0, 0)))   # resident, DMA'd once

    out = pl.pallas_call(
        kernel,
        out_shape=jax.ShapeDtypeStruct((N, C, HW), x.dtype),
        grid=grid,
        in_specs=in_specs,
        out_specs=pl.BlockSpec((b_tile, C, HW), lambda b: (b, 0, 0)),
        scratch_shapes=[pltpu.VMEM((C, L), jnp.float32),        # channel-major slab
                        pltpu.VMEM((9 * CP, L), jnp.float32)],  # stacked taps
        compiler_params=pltpu.CompilerParams(
            dimension_semantics=("parallel",),
            vmem_limit_bytes=vmem_limit),
    )(x, *params)

    return out.reshape(N, C, H, W)


# ----------------------- parameter setup (plain JAX glue) -----------------------

def init_raw_params(key, C, Cr):
    ks = jax.random.split(key, 11)

    def bn_params(k):
        k1, k2, k3, k4 = jax.random.split(k, 4)
        gamma = 1.0 + 0.1 * jax.random.normal(k1, (Cr,), jnp.float32)
        beta = 0.1 * jax.random.normal(k2, (Cr,), jnp.float32)
        mean = 0.1 * jax.random.normal(k3, (Cr,), jnp.float32)
        var = 0.5 + jax.random.uniform(k4, (Cr,), jnp.float32)
        return (gamma, beta, mean, var)

    return {
        'conv0_w': 0.2 * jax.random.normal(ks[0], (Cr, C, 1, 1), jnp.float32),
        'conv0_b': 0.1 * jax.random.normal(ks[1], (Cr,), jnp.float32),
        'bn0': bn_params(ks[2]),
        'convd0_w': 0.2 * jax.random.normal(ks[3], (Cr, Cr, 3, 3), jnp.float32),
        'convd0_b': 0.1 * jax.random.normal(ks[4], (Cr,), jnp.float32),
        'bn1': bn_params(ks[5]),
        'convd1_w': 0.2 * jax.random.normal(ks[6], (Cr, Cr, 3, 3), jnp.float32),
        'convd1_b': 0.1 * jax.random.normal(ks[7], (Cr,), jnp.float32),
        'bn2': bn_params(ks[8]),
        'convf_w': 0.2 * jax.random.normal(ks[9], (1, Cr, 1, 1), jnp.float32),
        'convf_b': 0.1 * jax.random.normal(ks[10], (1,), jnp.float32),
    }


def fold_params(raw, eps=1e-5):
    """Fold inference-mode BN into conv weights/biases, pad channels Cr -> CP, pack."""
    def scale_shift(bn, conv_b):
        gamma, beta, mean, var = bn
        s = gamma / jnp.sqrt(var + eps)
        return s, conv_b * s + beta - mean * s

    s1, b1 = scale_shift(raw['bn0'], raw['conv0_b'])
    s2, b2 = scale_shift(raw['bn1'], raw['convd0_b'])
    s3, b3 = scale_shift(raw['bn2'], raw['convd1_b'])

    Cr, C = raw['conv0_w'].shape[0], raw['conv0_w'].shape[1]
    CP = ((Cr + 7) // 8) * 8

    w1 = jnp.zeros((CP, C), jnp.float32).at[:Cr, :].set(
        raw['conv0_w'][:, :, 0, 0] * s1[:, None])

    def dil_w(w, s):  # (Co, Ci, 3, 3) -> (CP, 9*CP), col = t*CP + ci, zero padded
        Co, Ci = w.shape[0], w.shape[1]
        wt = jnp.transpose(w, (0, 2, 3, 1)) * s[:, None, None, None]   # (Co,3,3,Ci)
        out = jnp.zeros((CP, 9, CP), jnp.float32)
        out = out.at[:Co, :, :Ci].set(wt.reshape(Co, 9, Ci))
        return out.reshape(CP, 9 * CP)

    wd = jnp.concatenate([dil_w(raw['convd0_w'], s2),
                          dil_w(raw['convd1_w'], s3)], axis=0)          # (2*CP, 9*CP)

    # packed small params: cols 0..2 = biases of the three BN+conv stages,
    # [0,3] = final conv bias, col 4 = final conv weights (padded).
    bias = jnp.zeros((CP, 8), jnp.float32)
    bias = bias.at[:Cr, 0].set(b1).at[:Cr, 1].set(b2).at[:Cr, 2].set(b3)
    bias = bias.at[0, 3].set(raw['convf_b'][0])
    bias = bias.at[:Cr, 4].set(raw['convf_w'][:, :, 0, 0][0])

    return {'w1': w1, 'wd': wd, 'bias': bias}


def reference_forward(x, raw, eps=1e-5):
    def conv(h, w, b, dil=1, pad=0):
        y = jax.lax.conv_general_dilated(
            h, w, window_strides=(1, 1),
            padding=((pad, pad), (pad, pad)),
            rhs_dilation=(dil, dil),
            dimension_numbers=('NCHW', 'OIHW', 'NCHW'))
        return y + b[None, :, None, None]

    def bn(h, p):
        gamma, beta, mean, var = p
        s = (gamma / jnp.sqrt(var + eps))[None, :, None, None]
        return (h - mean[None, :, None, None]) * s + beta[None, :, None, None]

    h = jax.nn.relu(bn(conv(x, raw['conv0_w'], raw['conv0_b']), raw['bn0']))
    h = jax.nn.relu(bn(conv(h, raw['convd0_w'], raw['convd0_b'], dil=4, pad=4), raw['bn1']))
    h = jax.nn.relu(bn(conv(h, raw['convd1_w'], raw['convd1_b'], dil=4, pad=4), raw['bn2']))
    g = conv(h, raw['convf_w'], raw['convf_b'])
    return jnp.broadcast_to(g, x.shape)


if __name__ == "__main__":
    N, C, H, W = 4, 32, 16, 16        # gate_channel=32, reduction_ratio=16 -> Cr=2
    RR = 16
    Cr = C // RR

    key = jax.random.PRNGKey(0)
    kx, kp = jax.random.split(key)
    x = jax.random.normal(kx, (N, C, H, W), jnp.float32)

    raw = init_raw_params(kp, C, Cr)
    kparams = fold_params(raw)

    fwd = jax.jit(spatial_gate_forward, static_argnames=("cr", "b_tile"))
    out = fwd(x, kparams, cr=Cr)
    out = jax.block_until_ready(out)

    ref = reference_forward(x, raw)
    assert out.shape == x.shape, (out.shape, x.shape)
    err = float(jnp.max(jnp.abs(out - ref)))
    assert err < 3e-2, f"max abs err {err}"
    print("KERNEL_OK")
</pallas_src>

<mosaic_0001>
module attributes {stable_mosaic.version = 11 : i64} {
  func.func @kernel(%arg0: i32, %arg1: memref<2x32x256xf32, #tpu.memory_space<vmem>>, %arg2: memref<9x512xf32, #tpu.memory_space<vmem>>, %arg3: memref<8x32xf32, #tpu.memory_space<vmem>>, %arg4: memref<16x72xf32, #tpu.memory_space<vmem>>, %arg5: memref<8x8xf32, #tpu.memory_space<vmem>>, %arg6: memref<2x32x256xf32, #tpu.memory_space<vmem>>, %arg7: memref<32x512xf32, #tpu.memory_space<vmem>>, %arg8: memref<72x512xf32, #tpu.memory_space<vmem>>) attributes {dimension_semantics = [#tpu.dimension_semantics<parallel>], iteration_bounds = array<i64: 2>, scalar_prefetch = 0 : i64, scratch_operands = 2 : i64, tpu.core_type = #tpu.core_type<tc>, window_params = [{transform_indices = @transform_0, window_bounds = array<i64: 2, 32, 256>}, {pipeline_mode = #tpu.pipeline_mode<synchronous>, transform_indices = @transform_1, window_bounds = array<i64: 9, 512>}, {pipeline_mode = #tpu.pipeline_mode<synchronous>, transform_indices = @transform_2, window_bounds = array<i64: 8, 32>}, {pipeline_mode = #tpu.pipeline_mode<synchronous>, transform_indices = @transform_3, window_bounds = array<i64: 16, 72>}, {pipeline_mode = #tpu.pipeline_mode<synchronous>, transform_indices = @transform_4, window_bounds = array<i64: 8, 8>}, {transform_indices = @transform_5, window_bounds = array<i64: 2, 32, 256>}]} {
    %c0 = arith.constant 0 : index
    %c0_0 = arith.constant 0 : index
    %c0_1 = arith.constant 0 : index
    %0 = vector.load %arg1[%c0, %c0_0, %c0_1] : memref<2x32x256xf32, #tpu.memory_space<vmem>>, vector<1x32x256xf32>
    %1 = vector.shape_cast %0 : vector<1x32x256xf32> to vector<32x256xf32>
    %c0_2 = arith.constant 0 : index
    %c0_3 = arith.constant 0 : index
    %2 = vector.load %arg7[%c0_2, %c0_3] : memref<32x512xf32, #tpu.memory_space<vmem>>, vector<32x256xf32>
    tpu.vector_store %arg7[%c0_2, %c0_3], %1 {strides = array<i32>} : memref<32x512xf32, #tpu.memory_space<vmem>>, vector<32x256xf32>,
    %c1 = arith.constant 1 : index
    %c0_4 = arith.constant 0 : index
    %c0_5 = arith.constant 0 : index
    %3 = vector.load %arg1[%c1, %c0_4, %c0_5] : memref<2x32x256xf32, #tpu.memory_space<vmem>>, vector<1x32x256xf32>
    %4 = vector.shape_cast %3 : vector<1x32x256xf32> to vector<32x256xf32>
    %c0_6 = arith.constant 0 : index
    %c256 = arith.constant 256 : index
    %5 = vector.load %arg7[%c0_6, %c256] : memref<32x512xf32, #tpu.memory_space<vmem>>, vector<32x256xf32>
    tpu.vector_store %arg7[%c0_6, %c256], %4 {strides = array<i32>} : memref<32x512xf32, #tpu.memory_space<vmem>>, vector<32x256xf32>,
    %c0_7 = arith.constant 0 : index
    %c0_8 = arith.constant 0 : index
    %6 = vector.load %arg5[%c0_7, %c0_8] : memref<8x8xf32, #tpu.memory_space<vmem>>, vector<8x1xf32>
    %c0_9 = arith.constant 0 : index
    %c1_10 = arith.constant 1 : index
    %7 = vector.load %arg5[%c0_9, %c1_10] : memref<8x8xf32, #tpu.memory_space<vmem>>, vector<8x1xf32>
    %c0_11 = arith.constant 0 : index
    %c2 = arith.constant 2 : index
    %8 = vector.load %arg5[%c0_11, %c2] : memref<8x8xf32, #tpu.memory_space<vmem>>, vector<8x1xf32>
    %c0_12 = arith.constant 0 : index
    %c0_13 = arith.constant 0 : index
    %9 = vector.load %arg3[%c0_12, %c0_13] : memref<8x32xf32, #tpu.memory_space<vmem>>, vector<8x32xf32>
    %c0_14 = arith.constant 0 : index
    %c0_15 = arith.constant 0 : index
    %10 = vector.load %arg7[%c0_14, %c0_15] : memref<32x512xf32, #tpu.memory_space<vmem>>, vector<32x512xf32>
    %cst = arith.constant dense<0.000000e+00> : vector<8x512xf32>
    %11 = tpu.matmul %9, %10, %cst {dimension_numbers = #tpu.dot_dimension_numbers<[1], [0], [0], [1], [0, 0, 1, 1], [], []>} : vector<8x32xf32>, vector<32x512xf32>, vector<8x512xf32> -> vector<8x512xf32>
    %12 = vector.broadcast %6 : vector<8x1xf32> to vector<8x512xf32>
    %13 = arith.addf %11, %12 : vector<8x512xf32>
    %cst_16 = arith.constant 0.000000e+00 : f32
    %14 = vector.broadcast %cst_16 : f32 to vector<8x512xf32>
    %15 = arith.maximumf %13, %14 : vector<8x512xf32>
    %c0_17 = arith.constant 0 : index
    %c0_18 = arith.constant 0 : index
    %16 = vector.load %arg4[%c0_17, %c0_18] : memref<16x72xf32, #tpu.memory_space<vmem>>, vector<8x72xf32>
    %c68_i32 = arith.constant 68 : i32
    %17 = tpu.dynamic_rotate %15 by %c68_i32 dim 1 : vector<8x512xf32>, i32 -> vector<8x512xf32>
    %c0_19 = arith.constant 0 : index
    %c0_20 = arith.constant 0 : index
    %18 = vector.load %arg2[%c0_19, %c0_20] : memref<9x512xf32, #tpu.memory_space<vmem>>, vector<1x512xf32>
    %19 = vector.broadcast %18 : vector<1x512xf32> to vector<8x512xf32>
    %20 = arith.mulf %17, %19 : vector<8x512xf32>
    %c0_21 = arith.constant 0 : index
    %c0_22 = arith.constant 0 : index
    %21 = vector.load %arg8[%c0_21, %c0_22] : memref<72x512xf32, #tpu.memory_space<vmem>>, vector<8x512xf32>
    tpu.vector_store %arg8[%c0_21, %c0_22], %20 {strides = array<i32>} : memref<72x512xf32, #tpu.memory_space<vmem>>, vector<8x512xf32>,
    %c64_i32 = arith.constant 64 : i32
    %22 = tpu.dynamic_rotate %15 by %c64_i32 dim 1 : vector<8x512xf32>, i32 -> vector<8x512xf32>
    %c1_23 = arith.constant 1 : index
    %c0_24 = arith.constant 0 : index
    %23 = vector.load %arg2[%c1_23, %c0_24] : memref<9x512xf32, #tpu.memory_space<vmem>>, vector<1x512xf32>
    %24 = vector.broadcast %23 : vector<1x512xf32> to vector<8x512xf32>
    %25 = arith.mulf %22, %24 : vector<8x512xf32>
    %c8 = arith.constant 8 : index
    %c0_25 = arith.constant 0 : index
    %26 = vector.load %arg8[%c8, %c0_25] : memref<72x512xf32, #tpu.memory_space<vmem>>, vector<8x512xf32>
    tpu.vector_store %arg8[%c8, %c0_25], %25 {strides = array<i32>} : memref<72x512xf32, #tpu.memory_space<vmem>>, vector<8x512xf32>,
    %c60_i32 = arith.constant 60 : i32
    %27 = tpu.dynamic_rotate %15 by %c60_i32 dim 1 : vector<8x512xf32>, i32 -> vector<8x512xf32>
    %c2_26 = arith.constant 2 : index
    %c0_27 = arith.constant 0 : index
    %28 = vector.load %arg2[%c2_26, %c0_27] : memref<9x512xf32, #tpu.memory_space<vmem>>, vector<1x512xf32>
    %29 = vector.broadcast %28 : vector<1x512xf32> to vector<8x512xf32>
    %30 = arith.mulf %27, %29 : vector<8x512xf32>
    %c16 = arith.constant 16 : index
    %c0_28 = arith.constant 0 : index
    %31 = vector.load %arg8[%c16, %c0_28] : memref<72x512xf32, #tpu.memory_space<vmem>>, vector<8x512xf32>
    tpu.vector_store %arg8[%c16, %c0_28], %30 {strides = array<i32>} : memref<72x512xf32, #tpu.memory_space<vmem>>, vector<8x512xf32>,
    %c4_i32 = arith.constant 4 : i32
    %32 = tpu.dynamic_rotate %15 by %c4_i32 dim 1 : vector<8x512xf32>, i32 -> vector<8x512xf32>
    %c3 = arith.constant 3 : index
    %c0_29 = arith.constant 0 : index
    %33 = vector.load %arg2[%c3, %c0_29] : memref<9x512xf32, #tpu.memory_space<vmem>>, vector<1x512xf32>
    %34 = vector.broadcast %33 : vector<1x512xf32> to vector<8x512xf32>
    %35 = arith.mulf %32, %34 : vector<8x512xf32>
    %c24 = arith.constant 24 : index
    %c0_30 = arith.constant 0 : index
    %36 = vector.load %arg8[%c24, %c0_30] : memref<72x512xf32, #tpu.memory_space<vmem>>, vector<8x512xf32>
    tpu.vector_store %arg8[%c24, %c0_30], %35 {strides = array<i32>} : memref<72x512xf32, #tpu.memory_space<vmem>>, vector<8x512xf32>,
    %c32 = arith.constant 32 : index
    %c0_31 = arith.constant 0 : index
    %37 = vector.load %arg8[%c32, %c0_31] : memref<72x512xf32, #tpu.memory_space<vmem>>, vector<8x512xf32>
    tpu.vector_store %arg8[%c32, %c0_31], %15 {strides = array<i32>} : memref<72x512xf32, #tpu.memory_space<vmem>>, vector<8x512xf32>,
    %c508_i32 = arith.constant 508 : i32
    %38 = tpu.dynamic_rotate %15 by %c508_i32 dim 1 : vector<8x512xf32>, i32 -> vector<8x512xf32>
    %c5 = arith.constant 5 : index
    %c0_32 = arith.constant 0 : index
    %39 = vector.load %arg2[%c5, %c0_32] : memref<9x512xf32, #tpu.memory_space<vmem>>, vector<1x512xf32>
    %40 = vector.broadcast %39 : vector<1x512xf32> to vector<8x512xf32>
    %41 = arith.mulf %38, %40 : vector<8x512xf32>
    %c40 = arith.constant 40 : index
    %c0_33 = arith.constant 0 : index
    %42 = vector.load %arg8[%c40, %c0_33] : memref<72x512xf32, #tpu.memory_space<vmem>>, vector<8x512xf32>
    tpu.vector_store %arg8[%c40, %c0_33], %41 {strides = array<i32>} : memref<72x512xf32, #tpu.memory_space<vmem>>, vector<8x512xf32>,
    %c452_i32 = arith.constant 452 : i32
    %43 = tpu.dynamic_rotate %15 by %c452_i32 dim 1 : vector<8x512xf32>, i32 -> vector<8x512xf32>
    %c6 = arith.constant 6 : index
    %c0_34 = arith.constant 0 : index
    %44 = vector.load %arg2[%c6, %c0_34] : memref<9x512xf32, #tpu.memory_space<vmem>>, vector<1x512xf32>
    %45 = vector.broadcast %44 : vector<1x512xf32> to vector<8x512xf32>
    %46 = arith.mulf %43, %45 : vector<8x512xf32>
    %c48 = arith.constant 48 : index
    %c0_35 = arith.constant 0 : index
    %47 = vector.load %arg8[%c48, %c0_35] : memref<72x512xf32, #tpu.memory_space<vmem>>, vector<8x512xf32>
    tpu.vector_store %arg8[%c48, %c0_35], %46 {strides = array<i32>} : memref<72x512xf32, #tpu.memory_space<vmem>>, vector<8x512xf32>,
    %c448_i32 = arith.constant 448 : i32
    %48 = tpu.dynamic_rotate %15 by %c448_i32 dim 1 : vector<8x512xf32>, i32 -> vector<8x512xf32>
    %c7 = arith.constant 7 : index
    %c0_36 = arith.constant 0 : index
    %49 = vector.load %arg2[%c7, %c0_36] : memref<9x512xf32, #tpu.memory_space<vmem>>, vector<1x512xf32>
    %50 = vector.broadcast %49 : vector<1x512xf32> to vector<8x512xf32>
    %51 = arith.mulf %48, %50 : vector<8x512xf32>
    %c56 = arith.constant 56 : index
    %c0_37 = arith.constant 0 : index
    %52 = vector.load %arg8[%c56, %c0_37] : memref<72x512xf32, #tpu.memory_space<vmem>>, vector<8x512xf32>
    tpu.vector_store %arg8[%c56, %c0_37], %51 {strides = array<i32>} : memref<72x512xf32, #tpu.memory_space<vmem>>, vector<8x512xf32>,
    %c444_i32 = arith.constant 444 : i32
    %53 = tpu.dynamic_rotate %15 by %c444_i32 dim 1 : vector<8x512xf32>, i32 -> vector<8x512xf32>
    %c8_38 = arith.constant 8 : index
    %c0_39 = arith.constant 0 : index
    %54 = vector.load %arg2[%c8_38, %c0_39] : memref<9x512xf32, #tpu.memory_space<vmem>>, vector<1x512xf32>
    %55 = vector.broadcast %54 : vector<1x512xf32> to vector<8x512xf32>
    %56 = arith.mulf %53, %55 : vector<8x512xf32>
    %c64 = arith.constant 64 : index
    %c0_40 = arith.constant 0 : index
    %57 = vector.load %arg8[%c64, %c0_40] : memref<72x512xf32, #tpu.memory_space<vmem>>, vector<8x512xf32>
    tpu.vector_store %arg8[%c64, %c0_40], %56 {strides = array<i32>} : memref<72x512xf32, #tpu.memory_space<vmem>>, vector<8x512xf32>,
    %c0_41 = arith.constant 0 : index
    %c0_42 = arith.constant 0 : index
    %58 = vector.load %arg8[%c0_41, %c0_42] : memref<72x512xf32, #tpu.memory_space<vmem>>, vector<72x512xf32>
    %cst_43 = arith.constant dense<0.000000e+00> : vector<8x512xf32>
    %59 = tpu.matmul %16, %58, %cst_43 {dimension_numbers = #tpu.dot_dimension_numbers<[1], [0], [0], [1], [0, 0, 1, 1], [], []>} : vector<8x72xf32>, vector<72x512xf32>, vector<8x512xf32> -> vector<8x512xf32>
    %60 = vector.broadcast %7 : vector<8x1xf32> to vector<8x512xf32>
    %61 = arith.addf %59, %60 : vector<8x512xf32>
    %cst_44 = arith.constant 0.000000e+00 : f32
    %62 = vector.broadcast %cst_44 : f32 to vector<8x512xf32>
    %63 = arith.maximumf %61, %62 : vector<8x512xf32>
    %c8_45 = arith.constant 8 : index
    %c0_46 = arith.constant 0 : index
    %64 = vector.load %arg4[%c8_45, %c0_46] : memref<16x72xf32, #tpu.memory_space<vmem>>, vector<8x72xf32>
    %c68_i32_47 = arith.constant 68 : i32
    %65 = tpu.dynamic_rotate %63 by %c68_i32_47 dim 1 : vector<8x512xf32>, i32 -> vector<8x512xf32>
    %c0_48 = arith.constant 0 : index
    %c0_49 = arith.constant 0 : index
    %66 = vector.load %arg2[%c0_48, %c0_49] : memref<9x512xf32, #tpu.memory_space<vmem>>, vector<1x512xf32>
    %67 = vector.broadcast %66 : vector<1x512xf32> to vector<8x512xf32>
    %68 = arith.mulf %65, %67 : vector<8x512xf32>
    %c0_50 = arith.constant 0 : index
    %c0_51 = arith.constant 0 : index
    %69 = vector.load %arg8[%c0_50, %c0_51] : memref<72x512xf32, #tpu.memory_space<vmem>>, vector<8x512xf32>
    tpu.vector_store %arg8[%c0_50, %c0_51], %68 {strides = array<i32>} : memref<72x512xf32, #tpu.memory_space<vmem>>, vector<8x512xf32>,
    %c64_i32_52 = arith.constant 64 : i32
    %70 = tpu.dynamic_rotate %63 by %c64_i32_52 dim 1 : vector<8x512xf32>, i32 -> vector<8x512xf32>
    %c1_53 = arith.constant 1 : index
    %c0_54 = arith.constant 0 : index
    %71 = vector.load %arg2[%c1_53, %c0_54] : memref<9x512xf32, #tpu.memory_space<vmem>>, vector<1x512xf32>
    %72 = vector.broadcast %71 : vector<1x512xf32> to vector<8x512xf32>
    %73 = arith.mulf %70, %72 : vector<8x512xf32>
    %c8_55 = arith.constant 8 : index
    %c0_56 = arith.constant 0 : index
    %74 = vector.load %arg8[%c8_55, %c0_56] : memref<72x512xf32, #tpu.memory_space<vmem>>, vector<8x512xf32>
    tpu.vector_store %arg8[%c8_55, %c0_56], %73 {strides = array<i32>} : memref<72x512xf32, #tpu.memory_space<vmem>>, vector<8x512xf32>,
    %c60_i32_57 = arith.constant 60 : i32
    %75 = tpu.dynamic_rotate %63 by %c60_i32_57 dim 1 : vector<8x512xf32>, i32 -> vector<8x512xf32>
    %c2_58 = arith.constant 2 : index
    %c0_59 = arith.constant 0 : index
    %76 = vector.load %arg2[%c2_58, %c0_59] : memref<9x512xf32, #tpu.memory_space<vmem>>, vector<1x512xf32>
    %77 = vector.broadcast %76 : vector<1x512xf32> to vector<8x512xf32>
    %78 = arith.mulf %75, %77 : vector<8x512xf32>
    %c16_60 = arith.constant 16 : index
    %c0_61 = arith.constant 0 : index
    %79 = vector.load %arg8[%c16_60, %c0_61] : memref<72x512xf32, #tpu.memory_space<vmem>>, vector<8x512xf32>
    tpu.vector_store %arg8[%c16_60, %c0_61], %78 {strides = array<i32>} : memref<72x512xf32, #tpu.memory_space<vmem>>, vector<8x512xf32>,
    %c4_i32_62 = arith.constant 4 : i32
    %80 = tpu.dynamic_rotate %63 by %c4_i32_62 dim 1 : vector<8x512xf32>, i32 -> vector<8x512xf32>
    %c3_63 = arith.constant 3 : index
    %c0_64 = arith.constant 0 : index
    %81 = vector.load %arg2[%c3_63, %c0_64] : memref<9x512xf32, #tpu.memory_space<vmem>>, vector<1x512xf32>
    %82 = vector.broadcast %81 : vector<1x512xf32> to vector<8x512xf32>
    %83 = arith.mulf %80, %82 : vector<8x512xf32>
    %c24_65 = arith.constant 24 : index
    %c0_66 = arith.constant 0 : index
    %84 = vector.load %arg8[%c24_65, %c0_66] : memref<72x512xf32, #tpu.memory_space<vmem>>, vector<8x512xf32>
    tpu.vector_store %arg8[%c24_65, %c0_66], %83 {strides = array<i32>} : memref<72x512xf32, #tpu.memory_space<vmem>>, vector<8x512xf32>,
    %c32_67 = arith.constant 32 : index
    %c0_68 = arith.constant 0 : index
    %85 = vector.load %arg8[%c32_67, %c0_68] : memref<72x512xf32, #tpu.memory_space<vmem>>, vector<8x512xf32>
    tpu.vector_store %arg8[%c32_67, %c0_68], %63 {strides = array<i32>} : memref<72x512xf32, #tpu.memory_space<vmem>>, vector<8x512xf32>,
    %c508_i32_69 = arith.constant 508 : i32
    %86 = tpu.dynamic_rotate %63 by %c508_i32_69 dim 1 : vector<8x512xf32>, i32 -> vector<8x512xf32>
    %c5_70 = arith.constant 5 : index
    %c0_71 = arith.constant 0 : index
    %87 = vector.load %arg2[%c5_70, %c0_71] : memref<9x512xf32, #tpu.memory_space<vmem>>, vector<1x512xf32>
    %88 = vector.broadcast %87 : vector<1x512xf32> to vector<8x512xf32>
    %89 = arith.mulf %86, %88 : vector<8x512xf32>
    %c40_72 = arith.constant 40 : index
    %c0_73 = arith.constant 0 : index
    %90 = vector.load %arg8[%c40_72, %c0_73] : memref<72x512xf32, #tpu.memory_space<vmem>>, vector<8x512xf32>
    tpu.vector_store %arg8[%c40_72, %c0_73], %89 {strides = array<i32>} : memref<72x512xf32, #tpu.memory_space<vmem>>, vector<8x512xf32>,
    %c452_i32_74 = arith.constant 452 : i32
    %91 = tpu.dynamic_rotate %63 by %c452_i32_74 dim 1 : vector<8x512xf32>, i32 -> vector<8x512xf32>
    %c6_75 = arith.constant 6 : index
    %c0_76 = arith.constant 0 : index
    %92 = vector.load %arg2[%c6_75, %c0_76] : memref<9x512xf32, #tpu.memory_space<vmem>>, vector<1x512xf32>
    %93 = vector.broadcast %92 : vector<1x512xf32> to vector<8x512xf32>
    %94 = arith.mulf %91, %93 : vector<8x512xf32>
    %c48_77 = arith.constant 48 : index
    %c0_78 = arith.constant 0 : index
    %95 = vector.load %arg8[%c48_77, %c0_78] : memref<72x512xf32, #tpu.memory_space<vmem>>, vector<8x512xf32>
    tpu.vector_store %arg8[%c48_77, %c0_78], %94 {strides = array<i32>} : memref<72x512xf32, #tpu.memory_space<vmem>>, vector<8x512xf32>,
    %c448_i32_79 = arith.constant 448 : i32
    %96 = tpu.dynamic_rotate %63 by %c448_i32_79 dim 1 : vector<8x512xf32>, i32 -> vector<8x512xf32>
    %c7_80 = arith.constant 7 : index
    %c0_81 = arith.constant 0 : index
    %97 = vector.load %arg2[%c7_80, %c0_81] : memref<9x512xf32, #tpu.memory_space<vmem>>, vector<1x512xf32>
    %98 = vector.broadcast %97 : vector<1x512xf32> to vector<8x512xf32>
    %99 = arith.mulf %96, %98 : vector<8x512xf32>
    %c56_82 = arith.constant 56 : index
    %c0_83 = arith.constant 0 : index
    %100 = vector.load %arg8[%c56_82, %c0_83] : memref<72x512xf32, #tpu.memory_space<vmem>>, vector<8x512xf32>
    tpu.vector_store %arg8[%c56_82, %c0_83], %99 {strides = array<i32>} : memref<72x512xf32, #tpu.memory_space<vmem>>, vector<8x512xf32>,
    %c444_i32_84 = arith.constant 444 : i32
    %101 = tpu.dynamic_rotate %63 by %c444_i32_84 dim 1 : vector<8x512xf32>, i32 -> vector<8x512xf32>
    %c8_85 = arith.constant 8 : index
    %c0_86 = arith.constant 0 : index
    %102 = vector.load %arg2[%c8_85, %c0_86] : memref<9x512xf32, #tpu.memory_space<vmem>>, vector<1x512xf32>
    %103 = vector.broadcast %102 : vector<1x512xf32> to vector<8x512xf32>
    %104 = arith.mulf %101, %103 : vector<8x512xf32>
    %c64_87 = arith.constant 64 : index
    %c0_88 = arith.constant 0 : index
    %105 = vector.load %arg8[%c64_87, %c0_88] : memref<72x512xf32, #tpu.memory_space<vmem>>, vector<8x512xf32>
    tpu.vector_store %arg8[%c64_87, %c0_88], %104 {strides = array<i32>} : memref<72x512xf32, #tpu.memory_space<vmem>>, vector<8x512xf32>,
    %c0_89 = arith.constant 0 : index
    %c0_90 = arith.constant 0 : index
    %106 = vector.load %arg8[%c0_89, %c0_90] : memref<72x512xf32, #tpu.memory_space<vmem>>, vector<72x512xf32>
    %cst_91 = arith.constant dense<0.000000e+00> : vector<8x512xf32>
    %107 = tpu.matmul %64, %106, %cst_91 {dimension_numbers = #tpu.dot_dimension_numbers<[1], [0], [0], [1], [0, 0, 1, 1], [], []>} : vector<8x72xf32>, vector<72x512xf32>, vector<8x512xf32> -> vector<8x512xf32>
    %108 = vector.broadcast %8 : vector<8x1xf32> to vector<8x512xf32>
    %109 = arith.addf %107, %108 : vector<8x512xf32>
    %cst_92 = arith.constant 0.000000e+00 : f32
    %110 = vector.broadcast %cst_92 : f32 to vector<8x512xf32>
    %111 = arith.maximumf %109, %110 : vector<8x512xf32>
    %c0_93 = arith.constant 0 : index
    %c3_94 = arith.constant 3 : index
    %112 = vector.load %arg5[%c0_93, %c3_94] : memref<8x8xf32, #tpu.memory_space<vmem>>, vector<1x1xf32>
    %113 = vector.extract_strided_slice %111 {offsets = [0, 0], sizes = [1, 512], strides = [1, 1]} : vector<8x512xf32> to vector<1x512xf32>
    %c0_95 = arith.constant 0 : index
    %c4 = arith.constant 4 : index
    %114 = vector.load %arg5[%c0_95, %c4] : memref<8x8xf32, #tpu.memory_space<vmem>>, vector<1x1xf32>
    %115 = vector.broadcast %114 : vector<1x1xf32> to vector<1x512xf32>
    %116 = arith.mulf %113, %115 : vector<1x512xf32>
    %117 = vector.broadcast %112 : vector<1x1xf32> to vector<1x512xf32>
    %118 = arith.addf %117, %116 : vector<1x512xf32>
    %119 = vector.extract_strided_slice %111 {offsets = [1, 0], sizes = [1, 512], strides = [1, 1]} : vector<8x512xf32> to vector<1x512xf32>
    %c1_96 = arith.constant 1 : index
    %c4_97 = arith.constant 4 : index
    %120 = vector.load %arg5[%c1_96, %c4_97] : memref<8x8xf32, #tpu.memory_space<vmem>>, vector<1x1xf32>
    %121 = vector.broadcast %120 : vector<1x1xf32> to vector<1x512xf32>
    %122 = arith.mulf %119, %121 : vector<1x512xf32>
    %123 = arith.addf %118, %122 : vector<1x512xf32>
    %124 = vector.extract_strided_slice %123 {offsets = [0, 0], sizes = [1, 256], strides = [1, 1]} : vector<1x512xf32> to vector<1x256xf32>
    %125 = vector.shape_cast %124 : vector<1x256xf32> to vector<1x256xf32>
    %126 = vector.broadcast %125 : vector<1x256xf32> to vector<32x256xf32>
    %c0_98 = arith.constant 0 : index
    %c0_99 = arith.constant 0 : index
    %c0_100 = arith.constant 0 : index
    %127 = vector.load %arg6[%c0_98, %c0_99, %c0_100] : memref<2x32x256xf32, #tpu.memory_space<vmem>>, vector<1x32x256xf32>
    %128 = vector.shape_cast %127 : vector<1x32x256xf32> to vector<32x256xf32>
    %129 = vector.shape_cast %126 : vector<32x256xf32> to vector<1x32x256xf32>
    tpu.vector_store %arg6[%c0_98, %c0_99, %c0_100], %129 {strides = array<i32>} : memref<2x32x256xf32, #tpu.memory_space<vmem>>, vector<1x32x256xf32>,
    %130 = vector.extract_strided_slice %123 {offsets = [0, 256], sizes = [1, 256], strides = [1, 1]} : vector<1x512xf32> to vector<1x256xf32>
    %131 = vector.shape_cast %130 : vector<1x256xf32> to vector<1x256xf32>
    %132 = vector.broadcast %131 : vector<1x256xf32> to vector<32x256xf32>
    %c1_101 = arith.constant 1 : index
    %c0_102 = arith.constant 0 : index
    %c0_103 = arith.constant 0 : index
    %133 = vector.load %arg6[%c1_101, %c0_102, %c0_103] : memref<2x32x256xf32, #tpu.memory_space<vmem>>, vector<1x32x256xf32>
    %134 = vector.shape_cast %133 : vector<1x32x256xf32> to vector<32x256xf32>
    %135 = vector.shape_cast %132 : vector<32x256xf32> to vector<1x32x256xf32>
    tpu.vector_store %arg6[%c1_101, %c0_102, %c0_103], %135 {strides = array<i32>} : memref<2x32x256xf32, #tpu.memory_space<vmem>>, vector<1x32x256xf32>,
    return
  }
  func.func @transform_0(%arg0: i32) -> (i32, i32, i32) {
    %c0_i32 = arith.constant 0 : i32
    %c0_i32_0 = arith.constant 0 : i32
    %c0_i32_1 = arith.constant 0 : i32
    return %arg0, %c0_i32, %c0_i32_0 : i32, i32, i32
  }
  func.func @transform_1(%arg0: i32) -> (i32, i32) {
    %c0_i32 = arith.constant 0 : i32
    %c0_i32_0 = arith.constant 0 : i32
    %c0_i32_1 = arith.constant 0 : i32
    return %c0_i32, %c0_i32_0 : i32, i32
  }
  func.func @transform_2(%arg0: i32) -> (i32, i32) {
    %c0_i32 = arith.constant 0 : i32
    %c0_i32_0 = arith.constant 0 : i32
    %c0_i32_1 = arith.constant 0 : i32
    return %c0_i32, %c0_i32_0 : i32, i32
  }
  func.func @transform_3(%arg0: i32) -> (i32, i32) {
    %c0_i32 = arith.constant 0 : i32
    %c0_i32_0 = arith.constant 0 : i32
    %c0_i32_1 = arith.constant 0 : i32
    return %c0_i32, %c0_i32_0 : i32, i32
  }
  func.func @transform_4(%arg0: i32) -> (i32, i32) {
    %c0_i32 = arith.constant 0 : i32
    %c0_i32_0 = arith.constant 0 : i32
    %c0_i32_1 = arith.constant 0 : i32
    return %c0_i32, %c0_i32_0 : i32, i32
  }
  func.func @transform_5(%arg0: i32) -> (i32, i32, i32) {
    %c0_i32 = arith.constant 0 : i32
    %c0_i32_0 = arith.constant 0 : i32
    %c0_i32_1 = arith.constant 0 : i32
    return %arg0, %c0_i32, %c0_i32_0 : i32, i32, i32
  }
}

</mosaic_0001>

<bundles_post_ra>
// kernel: spatial_gate_forward.1
= control target key start
LH: loop header
LB: loop body
LE: loop exit
PB: predicated region body
PF: predicated region fallthrough
CT: control target
= control target key end

     0   :  { %s1703_s18 = smov 0   ;;  %s2187_s0 = inlined_call_operand.vmem [shape: f32[4,32,256], index: 0, kind: input, shape index: {}]   ;;  %s2188_s1 = inlined_call_operand.vmem [shape: f32[9,512], index: 1, kind: input, shape index: {}]   ;;  %s2189_s2 = inlined_call_operand.vmem [shape: f32[8,32], index: 2, kind: input, shape index: {}]   ;;  %s2190_s3 = inlined_call_operand.vmem [shape: f32[16,72], index: 3, kind: input, shape index: {}]   ;;  %s2191_s4 = inlined_call_operand.vmem [shape: f32[8,8], index: 4, kind: input, shape index: {}]   ;;  %s2192_s5 = inlined_call_operand.vmem [shape: f32[4,32,256], index: 5, kind: output, shape index: {}]  }
   0x1 LB: > { %s1578_s19 = sadd.s32 4294967295, %s1660_s18   ;;  %p1582_p0 = scmp.ge.s32.totalorder %s1660_s18, 1  ;;  %s1660_s18 = sphi %s1703_s18, %s15_s18  }
   0x2   : > { %p189_p1 = scmp.lt.s32.totalorder %s1660_s18, 3 }
   0x4   : > { %p190_p2 = pnand %p1582_p0, %p189_p1 }
   0x5   : > { %s1583_s20 = sshll.u32 (!%p190_p2), %s1578_s19, 1  ;;  %s1664_s29 = smov (!%p190_p2), 64  }
   0x6   : > { %193 = sbr.rel (%p190_p2) target bundleno = 954 (0x3ba), region = 40  ;;  %p220_p3 = scmp.lt.s32.totalorder (!%p190_p2), %s1583_s20, 3 }
   0x7   : > { %s1665_s30 = smov (!%p190_p2), 60   ;;  %s1666_s6 = smov (!%p190_p2), 68  }
   0x8   : > { %s1667_s7 = smov (!%p190_p2), 124   ;;  %s1668_s8 = smov (!%p190_p2), 4  }
   0xb   : > { %v1714_v0 = vld [vmem:[%s2191_s4] sm:$0xff]  ;;  %v1662_v1 = vmov 0.0   ;;  %v1663_v2 = vmov 0   ;;  %s2194_s20 = smov (!%p220_p3, %s1583_s20), 3  ;;  %vm289_vm0 = vcmask 261120   ;;  %v1669_v33 = vmov 1  }
   0xc   : > { %357 = vmatprep.mubr.f32.mxu0 %v1662_v1  ;;  %428 = vmatprep.mubr.f32.mxu1 %v1662_v1  ;;  %s1627_s23 = sshll.u32 %s2194_s20, 6  ;;  %v267_v19 = vld [vmem:[%s2189_s2] sm:$0xff]  ;;  %v448_v34 = vlaneseq  ;;  %vm798_vm6 = vcmask 588800  }
   0xd   : > { %1648 = vset.pattern.permute.xlu0 %v1663_v2  ;;  %s224_s26 = scalar_lea.vmem %s2187_s0, %s1627_s23  ;;  %1649 = vset.pattern.permute.xlu1 %v1669_v33  ;;  %v1605_v43 = vld [vmem:[%s2188_s1 + $0x20] ss:$8 sm:$0xf]  ;;  %v1604_v58 = vld [vmem:[%s2188_s1 + $0x7] ss:$8 sm:$0xf] }
   0xe   : > { %286 = vperm.xlu0 %1648, %v1714_v0   ;;  %v240_v3 = vld [vmem:[%s224_s26 + $0x38] sm:$0xff]  ;;  %v239_v5 = vld [vmem:[%s224_s26 + $0x30] sm:$0xff]  ;;  %v238_v7 = vld [vmem:[%s224_s26 + $0x28] sm:$0xff]  ;;  %v458_v37 = vshrl.u32 %v448_v34, 7  ;;  %v1783_v40 = vand.u32 127, %v448_v34 }
   0xf   : > { %v1596_v4 = vld [vmem:[%s224_s26 + $0x78] sm:$0xff]  ;;  %317 = vmatprep.subr.mxu0 %v240_v3  ;;  %v1595_v6 = vld [vmem:[%s224_s26 + $0x70] sm:$0xff]  ;;  %v1594_v8 = vld [vmem:[%s224_s26 + $0x68] sm:$0xff] }
  0x10   : > { %388 = vmatprep.subr.mxu1 %v1596_v4  ;;  %318 = vmatpush1.msra.mxu0 %v239_v5  ;;  %v237_v9 = vld [vmem:[%s224_s26 + $0x20] sm:$0xff]  ;;  %v236_v11 = vld [vmem:[%s224_s26 + $0x18] sm:$0xff]  ;;  %v235_v13 = vld [vmem:[%s224_s26 + $0x10] sm:$0xff]  ;;  %v1785_v41 = vsub.s32 0, %v458_v37  ;;  %v1787_v42 = vsub.s32 1, %v458_v37  ;;  %v1794_v46 = vsub.s32 3, %v458_v37 }
  0x11   : > { %389 = vmatpush1.msra.mxu1 %v1595_v6  ;;  %v1593_v10 = vld [vmem:[%s224_s26 + $0x60] sm:$0xff]  ;;  %319 = vmatprep.subr.mxu0 %v238_v7  ;;  %v1592_v12 = vld [vmem:[%s224_s26 + $0x58] sm:$0xff]  ;;  %v1591_v14 = vld [vmem:[%s224_s26 + $0x50] sm:$0xff]  ;;  %vm537_vm1 = vcmp.lt.s32.totalorder %v1783_v40, 60  ;;  %v1799_v49 = vsub.s32 2, %v458_v37  ;;  %vm493_vm2 = vcmp.lt.s32.totalorder %v1783_v40, 64 }
  0x12   : > { %390 = vmatprep.subr.mxu1 %v1594_v8  ;;  %320 = vmatpush1.msra.mxu0 %v237_v9  ;;  %v234_v15 = vld [vmem:[%s224_s26 + $0x8] sm:$0xff]  ;;  %v233_v17 = vld [vmem:[%s224_s26] sm:$0xff]  ;;  %v733_v47 = vrot.slane %v1605_v43, %v1785_v41  ;;  %v737_v48 = vrot.slane %v1605_v43, %v1787_v42  ;;  %v745_v57 = vrot.slane %v1605_v43, %v1794_v46  ;;  %vm450_vm3 = vcmp.lt.s32.totalorder %v1783_v40, 68 }
  0x13   : > { %391 = vmatpush1.msra.mxu1 %v1593_v10  ;;  %v1590_v16 = vld [vmem:[%s224_s26 + $0x48] sm:$0xff]  ;;  %321 = vmatprep.subr.mxu0 %v236_v11  ;;  %v1589_v18 = vld [vmem:[%s224_s26 + $0x40] sm:$0xff]  ;;  %v741_v56 = vrot.slane %v1605_v43, %v1799_v49  ;;  %v714_v3 = vrot.slane %v1604_v58, %v1794_v46  ;;  %v710_v4 = vrot.slane %v1604_v58, %v1799_v49  ;;  %vm629_vm4 = vcmp.lt.s32.totalorder %v1783_v40, 124 }
  0x14   : > { %392 = vmatprep.subr.mxu1 %v1592_v12  ;;  %322 = vmatpush1.msra.mxu0 %v235_v13  ;;  %v702_v5 = vrot.slane %v1604_v58, %v1785_v41  ;;  %v706_v6 = vrot.slane %v1604_v58, %v1787_v42  ;;  %v1603_v7 = vld [vmem:[%s2188_s1 + $0x6] ss:$8 sm:$0xf]  ;;  %v1601_v34 = vld [vmem:[%s2188_s1 + $0x3] ss:$8 sm:$0xf] }
  0x15   : > { %393 = vmatpush1.msra.mxu1 %v1591_v14  ;;  %323 = vmatprep.subr.mxu0 %v234_v15  ;;  %v1602_v14 = vld [vmem:[%s2188_s1 + $0x5] ss:$8 sm:$0xf]  ;;  %vm581_vm5 = vcmp.lt.s32.totalorder %v1783_v40, 4 }
  0x16   : > { %394 = vmatprep.subr.mxu1 %v1590_v16  ;;  %324 = vmatpush1.msra.mxu0 %v233_v17  ;;  %v679_v16 = vrot.slane %v1603_v7, %v1799_v49  ;;  %v683_v17 = vrot.slane %v1603_v7, %v1794_v46  ;;  %v640_v37 = vrot.slane %v1602_v14, %v1785_v41 }
  0x17   : > { %395 = vmatpush1.msra.mxu1 %v1589_v18  ;;  %1597 = vmatmul.mubr.msk.f32.vlgmr.msra.gmra.mxu0 %vm289_vm0, %v267_v19  ;;  %v671_v18 = vrot.slane %v1603_v7, %v1785_v41 }
  0x18   : > { %1598 = vmatmul.mubr.msk.f32.vlgmr.msra.gmra.mxu1 %vm289_vm0, %v267_v19  ;;  %866 = vmatprep.mubr.f32.mxu0 %v1662_v1 }
  0x19   : > { %937 = vmatprep.mubr.f32.mxu1 %v1662_v1 }
  0x89   : > { %v287_v20 = vpop.permute.xlu0 %286 }
  0xd7   : > { %v359_v21 = vpop.f32.mrf.mxu0 }
  0xd8   : > { %v430_v22 = vpop.f32.mrf.mxu1  ;;  %v360_v24 = vadd.f32 %v359_v21, %v287_v20 }
  0xd9   : > { %v431_v23 = vadd.f32 %v430_v22, %v287_v20  ;;  %v361_v27 = vpop.f32.mrf.mxu0  ;;  %v675_v22 = vrot.slane %v1603_v7, %v1787_v42  ;;  %v600_v7 = vrot.slane %v1601_v34, %v1799_v49 }
  0xda   : > { %v1738_v26 = vmax.f32 %v360_v24, 0.0  ;;  %v362_v28 = vadd.f32 %v361_v27, %v287_v20  ;;  %v432_v29 = vpop.f32.mrf.mxu1  ;;  %v648_v27 = vrot.slane %v1602_v14, %v1799_v49 }
  0xdb   : > { %v1732_v25 = vmax.f32 %v431_v23, 0.0  ;;  %v433_v31 = vadd.f32 %v432_v29, %v287_v20 }
  0xdc   : > { %v1748_v30 = vmax.f32 %v362_v28, 0.0 }
  0xdd   : > { %489 = vrot.lane.b32.xlu0 %v1732_v25, %s1664_s29  ;;  %533 = vrot.lane.b32.xlu1 %v1732_v25, %s1665_s30  ;;  %v1754_v32 = vmax.f32 %v433_v31, 0.0 }
  0xe1   : > { %444 = vrot.lane.b32.xlu0 %v1732_v25, %s1666_s6  ;;  %529 = vrot.lane.b32.xlu1 %v1738_v26, %s1665_s30 }
  0xe5   : > { %625 = vrot.lane.b32.xlu0 %v1732_v25, %s1667_s7  ;;  %485 = vrot.lane.b32.xlu1 %v1738_v26, %s1664_s29 }
  0xe9   : > { %531 = vrot.lane.b32.xlu0 %v1748_v30, %s1665_s30  ;;  %440 = vrot.lane.b32.xlu1 %v1738_v26, %s1666_s6 }
  0xed   : > { %535 = vrot.lane.b32.xlu0 %v1754_v32, %s1665_s30  ;;  %621 = vrot.lane.b32.xlu1 %v1738_v26, %s1667_s7 }
  0xf1   : > { %491 = vrot.lane.b32.xlu0 %v1754_v32, %s1664_s29  ;;  %487 = vrot.lane.b32.xlu1 %v1748_v30, %s1664_s29 }
  0xf5   : > { %446 = vrot.lane.b32.xlu0 %v1754_v32, %s1666_s6  ;;  %442 = vrot.lane.b32.xlu1 %v1748_v30, %s1666_s6 }
  0xf9   : > { %627 = vrot.lane.b32.xlu0 %v1754_v32, %s1667_s7  ;;  %623 = vrot.lane.b32.xlu1 %v1748_v30, %s1667_s7 }
  0xfd   : > { %575 = vrot.lane.b32.xlu0 %v1748_v30, %s1668_s8  ;;  %573 = vrot.lane.b32.xlu1 %v1738_v26, %s1668_s8 }
 0x101   : > { %579 = vrot.lane.b32.xlu0 %v1754_v32, %s1668_s8  ;;  %577 = vrot.lane.b32.xlu1 %v1732_v25, %s1668_s8 }
 0x105   : > { %795 = vperm.xlu1 %1649, %v1714_v0  }
 0x14f   : > { %v490_v35 = vpop.permute.xlu0 %489  ;;  %v534_v36 = vpop.permute.xlu1 %533 }
 0x153   : > { %v1781_v38 = vpop.permute.xlu0 %444  ;;  %v530_v39 = vpop.permute.xlu1 %529 }
 0x157   : > { %v1792_v44 = vpop.permute.xlu0 %625  ;;  %v486_v45 = vpop.permute.xlu1 %485 }
 0x15b   : > { %v532_v50 = vpop.permute.xlu0 %531  ;;  %v441_v51 = vpop.permute.xlu1 %440 }
 0x15c   : > { %v1803_v52 = vsel %vm537_vm1, %v532_v50, %v534_v36  ;;  %v1807_v53 = vsel %vm537_vm1, %v530_v39, %v532_v50  ;;  %v596_v50 = vrot.slane %v1601_v34, %v1787_v42 }
 0x15d   : > { %v750_v54 = vmul.f32 %v733_v47, %v1807_v53  ;;  %v751_v55 = vmul.f32 %v737_v48, %v1803_v52 }
 0x15f   : > { %816 = vmatprep.subr.mxu0 %v751_v55  ;;  %v536_v59 = vpop.permute.xlu0 %535  ;;  %v622_v60 = vpop.permute.xlu1 %621 }
 0x160   : > { %v1818_v61 = vsel %vm537_vm1, %v534_v36, %v536_v59  ;;  %v1822_v62 = vsel %vm537_vm1, %v536_v59, %v530_v39  ;;  %817 = vmatpush1.msra.mxu0 %v750_v54  ;;  %v652_v36 = vrot.slane %v1602_v14, %v1794_v46  ;;  %v644_v39 = vrot.slane %v1602_v14, %v1787_v42 }
 0x161   : > { %v752_v63 = vmul.f32 %v741_v56, %v1818_v61  ;;  %v753_v2 = vmul.f32 %v745_v57, %v1822_v62 }
 0x163   : > { %v492_v8 = vpop.permute.xlu0 %491  ;;  %887 = vmatprep.subr.mxu1 %v753_v2  ;;  %v488_v9 = vpop.permute.xlu1 %487  ;;  %v1600_v2 = vld [vmem:[%s2188_s1 + $0x2] ss:$8 sm:$0xf] }
 0x164   : > { %v1837_v10 = vsel %vm493_vm2, %v490_v35, %v492_v8  ;;  %v1841_v11 = vsel %vm493_vm2, %v492_v8, %v486_v45  ;;  %v1845_v12 = vsel %vm493_vm2, %v488_v9, %v490_v35  ;;  %v1849_v13 = vsel %vm493_vm2, %v486_v45, %v488_v9  ;;  %888 = vmatpush1.msra.mxu1 %v752_v63 }
 0x165   : > { %v722_v15 = vmul.f32 %v714_v3, %v1841_v11  ;;  %v721_v19 = vmul.f32 %v710_v4, %v1837_v10  ;;  %v719_v20 = vmul.f32 %v702_v5, %v1849_v13  ;;  %v720_v21 = vmul.f32 %v706_v6, %v1845_v12 }
 0x166   : > { %v592_v5 = vrot.slane %v1601_v34, %v1785_v41  ;;  %v604_v8 = vrot.slane %v1601_v34, %v1794_v46  ;;  %v552_v9 = vrot.slane %v1600_v2, %v1787_v42  ;;  %v556_v14 = vrot.slane %v1600_v2, %v1799_v49 }
 0x167   : > { %v447_v23 = vpop.permute.xlu0 %446  ;;  %889 = vmatprep.subr.mxu1 %v722_v15  ;;  %v443_v24 = vpop.permute.xlu1 %442  ;;  %818 = vmatprep.subr.mxu0 %v720_v21  ;;  %v548_v15 = vrot.slane %v1600_v2, %v1785_v41 }
 0x168   : > { %v1867_v28 = vsel %vm450_vm3, %v1781_v38, %v447_v23  ;;  %v1871_v29 = vsel %vm450_vm3, %v447_v23, %v441_v51  ;;  %v1876_v31 = vsel %vm450_vm3, %v443_v24, %v1781_v38  ;;  %v1880_v33 = vsel %vm450_vm3, %v441_v51, %v443_v24  ;;  %819 = vmatpush1.msra.mxu0 %v719_v20 }
 0x169   : > { %v691_v35 = vmul.f32 %v683_v17, %v1871_v29  ;;  %v690_v38 = vmul.f32 %v679_v16, %v1867_v28  ;;  %v688_v43 = vmul.f32 %v671_v18, %v1880_v33  ;;  %v689_v45 = vmul.f32 %v675_v22, %v1876_v31  ;;  %890 = vmatpush1.msra.mxu1 %v721_v19 }
 0x16a   : > { %v560_v16 = vrot.slane %v1600_v2, %v1794_v46  ;;  %v1460_v2 = vld [vmem:[%s2191_s4 + $0x1] sm:$0x1] }
 0x16b   : > { %v628_v47 = vpop.permute.xlu0 %627  ;;  %891 = vmatprep.subr.mxu1 %v691_v35  ;;  %v624_v48 = vpop.permute.xlu1 %623  ;;  %820 = vmatprep.subr.mxu0 %v689_v45 }
 0x16c   : > { %v630_v51 = vsel %vm629_vm4, %v1792_v44, %v628_v47  ;;  %v633_v54 = vsel %vm629_vm4, %v628_v47, %v622_v60  ;;  %v631_v55 = vsel %vm629_vm4, %v624_v48, %v1792_v44  ;;  %v632_v56 = vsel %vm629_vm4, %v622_v60, %v624_v48  ;;  %821 = vmatpush1.msra.mxu0 %v688_v43  ;;  %v1599_v44 = vld [vmem:[%s2188_s1 + $0x1] ss:$8 sm:$0xf] }
 0x16d   : > { %v659_v57 = vmul.f32 %v648_v27, %v630_v51  ;;  %v660_v58 = vmul.f32 %v652_v36, %v633_v54  ;;  %v657_v59 = vmul.f32 %v640_v37, %v632_v56  ;;  %v658_v63 = vmul.f32 %v644_v39, %v631_v55  ;;  %892 = vmatpush1.msra.mxu1 %v690_v38 }
 0x16e   : > { %v508_v19 = vrot.slane %v1599_v44, %v1787_v42  ;;  %v516_v21 = vrot.slane %v1599_v44, %v1794_v46  ;;  %v566_v27 = vmul.f32 %v552_v9, %v1807_v53  ;;  %v512_v34 = vrot.slane %v1599_v44, %v1799_v49 }
 0x16f   : > { %v576_v3 = vpop.permute.xlu0 %575  ;;  %822 = vmatprep.subr.mxu0 %v658_v63  ;;  %893 = vmatprep.subr.mxu1 %v660_v58  ;;  %v574_v4 = vpop.permute.xlu1 %573  ;;  %v565_v37 = vmul.f32 %v548_v15, %v1822_v62  ;;  %v568_v39 = vmul.f32 %v560_v16, %v1818_v61  ;;  %v567_v43 = vmul.f32 %v556_v14, %v1803_v52  ;;  %v1671_v63 = vmov 2  }
 0x170   : > { %v584_v60 = vsel %vm581_vm5, %v574_v4, %v576_v3  ;;  %823 = vmatpush1.msra.mxu0 %v657_v59  ;;  %894 = vmatpush1.msra.mxu1 %v659_v57  ;;  %v522_v45 = vmul.f32 %v508_v19, %v1849_v13  ;;  %v524_v48 = vmul.f32 %v516_v21, %v1837_v10  ;;  %v1670_v59 = vmov 4  }
 0x171   : > { %v610_v6 = vmul.f32 %v596_v50, %v584_v60  ;;  %824 = vmatprep.subr.mxu0 %v1748_v30  ;;  %895 = vmatprep.subr.mxu1 %v1754_v32  ;;  %v504_v30 = vrot.slane %v1599_v44, %v1785_v41  ;;  %v455_v32 = vld [vmem:[%s2188_s1] ss:$8 sm:$0xf]  ;;  %v523_v61 = vmul.f32 %v512_v34, %v1845_v12  ;;  %v1612_v34 = vld [vmem:[%s2188_s1 + $0x6] ss:$8 sm:$0xf] }
 0x172   : > { %825 = vmatpush1.msra.mxu0 %v1738_v26  ;;  %896 = vmatpush1.msra.mxu1 %v1732_v25  ;;  %v460_v35 = vrot.slane %v455_v32, %v1785_v41  ;;  %v464_v36 = vrot.slane %v455_v32, %v1787_v42  ;;  %v472_v38 = vrot.slane %v455_v32, %v1794_v46 }
 0x173   : > { %v580_v17 = vpop.permute.xlu0 %579  ;;  %826 = vmatprep.subr.mxu0 %v610_v6  ;;  %v578_v18 = vpop.permute.xlu1 %577  ;;  %v468_v53 = vrot.slane %v455_v32, %v1799_v49  ;;  %v521_v47 = vmul.f32 %v504_v30, %v1841_v11  ;;  %v439_v11 = vld [vmem:[%s2190_s3] sm:$0xff]  ;;  %1651 = vset.pattern.permute.xlu1 %v1670_v59 }
 0x174   : > { %v585_v25 = vsel %vm581_vm5, %v580_v17, %v574_v4  ;;  %v582_v26 = vsel %vm581_vm5, %v578_v18, %v580_v17  ;;  %v583_v20 = vsel %vm581_vm5, %v576_v3, %v578_v18  ;;  %v478_v62 = vmul.f32 %v464_v36, %v1880_v33  ;;  %1650 = vset.pattern.permute.xlu0 %v1671_v63  ;;  %v1442_v3 = vld [vmem:[%s2191_s4] sm:$0x1]  ;;  %v1613_v30 = vld [vmem:[%s2188_s1 + $0x7] ss:$8 sm:$0xf] }
 0x175   : > { %v609_v22 = vmul.f32 %v592_v5, %v585_v25  ;;  %v611_v23 = vmul.f32 %v600_v7, %v583_v20  ;;  %v612_v24 = vmul.f32 %v604_v8, %v582_v26  ;;  %v477_v52 = vmul.f32 %v460_v35, %v1871_v29 }
 0x176   : > { %v480_v13 = vmul.f32 %v472_v38, %v1867_v28  ;;  %v479_v10 = vmul.f32 %v468_v53, %v1876_v31  ;;  %v1672_v4 = vmov 3   ;;  %v1210_v38 = vrot.slane %v1613_v30, %v1794_v46 }
 0x177   : > { %827 = vmatpush1.msra.mxu0 %v609_v22  ;;  %897 = vmatprep.subr.mxu1 %v612_v24  ;;  %v1198_v22 = vrot.slane %v1613_v30, %v1785_v41 }
 0x178   : > { %828 = vmatprep.subr.mxu0 %v566_v27  ;;  %898 = vmatpush1.msra.mxu1 %v611_v23  ;;  %v1202_v23 = vrot.slane %v1613_v30, %v1787_v42 }
 0x179   : > { %829 = vmatpush1.msra.mxu0 %v565_v37  ;;  %899 = vmatprep.subr.mxu1 %v568_v39  ;;  %v1206_v39 = vrot.slane %v1613_v30, %v1799_v49 }
 0x17a   : > { %830 = vmatprep.subr.mxu0 %v522_v45  ;;  %900 = vmatpush1.msra.mxu1 %v567_v43 }
 0x17b   : > { %831 = vmatpush1.msra.mxu0 %v521_v47  ;;  %901 = vmatprep.subr.mxu1 %v524_v48 }
 0x17c   : > { %832 = vmatprep.subr.mxu0 %v478_v62  ;;  %902 = vmatpush1.msra.mxu1 %v523_v61  ;;  %v1168_v61 = vrot.slane %v1612_v34, %v1785_v41  ;;  %v1172_v62 = vrot.slane %v1612_v34, %v1787_v42 }
 0x17d   : > { %833 = vmatpush1.msra.mxu0 %v477_v52  ;;  %903 = vmatprep.subr.mxu1 %v480_v13 }
 0x17e   : > { %1606 = vmatmul.mubr.msk.f32.vlgmr.msra.gmra.mxu0 %vm798_vm6, %v439_v11  ;;  %904 = vmatpush1.msra.mxu1 %v479_v10 }
 0x17f   : > { %1607 = vmatmul.mubr.msk.f32.vlgmr.msra.gmra.mxu1 %vm798_vm6, %v439_v11  ;;  %1360 = vmatprep.mubr.f32.mxu0 %v1662_v1  ;;  %v1611_v11 = vld [vmem:[%s2188_s1 + $0x5] ss:$8 sm:$0xf] }
 0x180   : > { %1431 = vmatprep.mubr.f32.mxu1 %v1662_v1  ;;  %v796_v12 = vpop.permute.xlu1 %795  ;;  %v1142_v63 = vrot.slane %v1611_v11, %v1787_v42 }
 0x23e   : > { %v868_v28 = vpop.f32.mrf.mxu0 }
 0x23f   : > { %v869_v29 = vadd.f32 %v868_v28, %v796_v12  ;;  %v939_v33 = vpop.f32.mrf.mxu1 }
 0x240   : > { %v940_v50 = vadd.f32 %v939_v33, %v796_v12  ;;  %v870_v1 = vpop.f32.mrf.mxu0  ;;  %v1180_v33 = vrot.slane %v1612_v34, %v1794_v46 }
 0x241   : > { %v1959_v51 = vmax.f32 %v869_v29, 0.0  ;;  %v941_v54 = vpop.f32.mrf.mxu1  ;;  %v871_v55 = vadd.f32 %v870_v1, %v796_v12  ;;  %v1176_v29 = vrot.slane %v1612_v34, %v1799_v49 }
 0x242   : > { %v1961_v31 = vmax.f32 %v940_v50, 0.0  ;;  %v942_v56 = vadd.f32 %v941_v54, %v796_v12 }
 0x243   : > { %1033 = vrot.lane.b32.xlu0 %v1959_v51, %s1665_s30  ;;  %v1979_v57 = vmax.f32 %v871_v55, 0.0 }
 0x244   : > { %1037 = vrot.lane.b32.xlu1 %v1961_v31, %s1665_s30  ;;  %v1981_v58 = vmax.f32 %v942_v56, 0.0 }
 0x247   : > { %991 = vrot.lane.b32.xlu0 %v1959_v51, %s1664_s29 }
 0x248   : > { %995 = vrot.lane.b32.xlu1 %v1961_v31, %s1664_s29 }
 0x24b   : > { %949 = vrot.lane.b32.xlu0 %v1959_v51, %s1666_s6 }
 0x24c   : > { %953 = vrot.lane.b32.xlu1 %v1961_v31, %s1666_s6 }
 0x24f   : > { %1121 = vrot.lane.b32.xlu0 %v1959_v51, %s1667_s7 }
 0x250   : > { %1125 = vrot.lane.b32.xlu1 %v1961_v31, %s1667_s7 }
 0x253   : > { %1035 = vrot.lane.b32.xlu0 %v1979_v57, %s1665_s30 }
 0x254   : > { %1039 = vrot.lane.b32.xlu1 %v1981_v58, %s1665_s30 }
 0x257   : > { %993 = vrot.lane.b32.xlu0 %v1979_v57, %s1664_s29 }
 0x258   : > { %997 = vrot.lane.b32.xlu1 %v1981_v58, %s1664_s29 }
 0x25b   : > { %951 = vrot.lane.b32.xlu0 %v1979_v57, %s1666_s6 }
 0x25c   : > { %955 = vrot.lane.b32.xlu1 %v1981_v58, %s1666_s6  ;;  %s231_s6 = scalar_lea.vmem %s2192_s5, %s1627_s23 }
 0x25f   : > { %1123 = vrot.lane.b32.xlu0 %v1979_v57, %s1667_s7 }
 0x260   : > { %1127 = vrot.lane.b32.xlu1 %v1981_v58, %s1667_s7 }
 0x263   : > { %1075 = vrot.lane.b32.xlu0 %v1959_v51, %s1668_s8 }
 0x264   : > { %1077 = vrot.lane.b32.xlu1 %v1979_v57, %s1668_s8 }
 0x267   : > { %1079 = vrot.lane.b32.xlu0 %v1961_v31, %s1668_s8 }
 0x268   : > { %1081 = vrot.lane.b32.xlu1 %v1981_v58, %s1668_s8 }
 0x26b   : > { %1290 = vperm.xlu0 %1650, %v1714_v0   ;;  %v1614_v0 = vld [vmem:[%s2188_s1 + $0x20] ss:$8 sm:$0xf] }
 0x26c   : > { %1463 = vperm.xlu1 %1651, %v1460_v2   ;;  %v1228_v15 = vrot.slane %v1614_v0, %v1785_v41  ;;  %v1232_v16 = vrot.slane %v1614_v0, %v1787_v42  ;;  %v1236_v17 = vrot.slane %v1614_v0, %v1799_v49  ;;  %v1240_v18 = vrot.slane %v1614_v0, %v1794_v46 }
 0x26f   : > { %1652 = vset.pattern.permute.xlu0 %v1672_v4  ;;  %v1146_v4 = vrot.slane %v1611_v11, %v1799_v49 }
 0x270   : > { %1445 = vperm.xlu1 %1651, %v1442_v3   ;;  %1453 = vperm.xlu0 %1652, %v1442_v3  }
 0x274   : > { %1653 = vset.pattern.permute.xlu0 %v1670_v59  ;;  %v1138_v59 = vrot.slane %v1611_v11, %v1785_v41 }
 0x2b5   : > { %v1034_v44 = vpop.permute.xlu0 %1033 }
 0x2b6   : > { %v1038_v60 = vpop.permute.xlu1 %1037 }
 0x2b9   : > { %v992_v5 = vpop.permute.xlu0 %991 }
 0x2ba   : > { %v996_v6 = vpop.permute.xlu1 %995 }
 0x2bd   : > { %v950_v7 = vpop.permute.xlu0 %949 }
 0x2be   : > { %v954_v8 = vpop.permute.xlu1 %953 }
 0x2c1   : > { %v2017_v9 = vpop.permute.xlu0 %1121 }
 0x2c2   : > { %v2019_v14 = vpop.permute.xlu1 %1125 }
 0x2c5   : > { %v1036_v32 = vpop.permute.xlu0 %1035 }
 0x2c6   : > { %v2030_v19 = vsel %vm537_vm1, %v1036_v32, %v1038_v60  ;;  %v2034_v25 = vsel %vm537_vm1, %v1034_v44, %v1036_v32  ;;  %v1040_v26 = vpop.permute.xlu1 %1039 }
 0x2c7   : > { %v1245_v20 = vmul.f32 %v1228_v15, %v2034_v25  ;;  %v1246_v21 = vmul.f32 %v1232_v16, %v2030_v19  ;;  %v2042_v24 = vsel %vm537_vm1, %v1038_v60, %v1040_v26  ;;  %v2046_v27 = vsel %vm537_vm1, %v1040_v26, %v1034_v44 }
 0x2c8   : > { %v1247_v35 = vmul.f32 %v1236_v17, %v2042_v24  ;;  %v1248_v36 = vmul.f32 %v1240_v18, %v2046_v27  ;;  %v1150_v44 = vrot.slane %v1611_v11, %v1794_v46 }
 0x2c9   : > { %1310 = vmatprep.subr.mxu0 %v1246_v21  ;;  %v994_v37 = vpop.permute.xlu0 %993 }
 0x2ca   : > { %v2057_v43 = vsel %vm493_vm2, %v994_v37, %v996_v6  ;;  %v2061_v45 = vsel %vm493_vm2, %v992_v5, %v994_v37  ;;  %v998_v53 = vpop.permute.xlu1 %997  ;;  %1311 = vmatpush1.msra.mxu0 %v1245_v20  ;;  %1381 = vmatprep.subr.mxu1 %v1248_v36 }
 0x2cb   : > { %v1215_v47 = vmul.f32 %v1198_v22, %v2061_v45  ;;  %v1216_v48 = vmul.f32 %v1202_v23, %v2057_v43  ;;  %v2069_v52 = vsel %vm493_vm2, %v996_v6, %v998_v53  ;;  %v2073_v13 = vsel %vm493_vm2, %v998_v53, %v992_v5  ;;  %1382 = vmatpush1.msra.mxu1 %v1247_v35  ;;  %v1609_v22 = vld [vmem:[%s2188_s1 + $0x2] ss:$8 sm:$0xf] }
 0x2cc   : > { %v1217_v10 = vmul.f32 %v1206_v39, %v2069_v52  ;;  %v1218_v12 = vmul.f32 %v1210_v38, %v2073_v13  ;;  %v1054_v37 = vrot.slane %v1609_v22, %v1787_v42  ;;  %v1058_v38 = vrot.slane %v1609_v22, %v1799_v49 }
 0x2cd   : > { %1312 = vmatprep.subr.mxu0 %v1216_v48  ;;  %v952_v28 = vpop.permute.xlu0 %951  ;;  %v1050_v53 = vrot.slane %v1609_v22, %v1785_v41 }
 0x2ce   : > { %v2084_v50 = vsel %vm450_vm3, %v952_v28, %v954_v8  ;;  %v2088_v1 = vsel %vm450_vm3, %v950_v7, %v952_v28  ;;  %v956_v54 = vpop.permute.xlu1 %955  ;;  %1313 = vmatpush1.msra.mxu0 %v1215_v47  ;;  %1383 = vmatprep.subr.mxu1 %v1218_v12  ;;  %v1062_v47 = vrot.slane %v1609_v22, %v1794_v46 }
 0x2cf   : > { %v1185_v55 = vmul.f32 %v1168_v61, %v2088_v1  ;;  %v1186_v56 = vmul.f32 %v1172_v62, %v2084_v50  ;;  %v2096_v2 = vsel %vm450_vm3, %v954_v8, %v956_v54  ;;  %v2100_v3 = vsel %vm450_vm3, %v956_v54, %v950_v7  ;;  %1384 = vmatpush1.msra.mxu1 %v1217_v10  ;;  %v1610_v8 = vld [vmem:[%s2188_s1 + $0x3] ss:$8 sm:$0xf] }
 0x2d0   : > { %v1187_v60 = vmul.f32 %v1176_v29, %v2096_v2  ;;  %v1188_v5 = vmul.f32 %v1180_v33, %v2100_v3  ;;  %v1096_v20 = vrot.slane %v1610_v8, %v1787_v42  ;;  %v1092_v35 = vrot.slane %v1610_v8, %v1785_v41 }
 0x2d1   : > { %1314 = vmatprep.subr.mxu0 %v1186_v56  ;;  %v1124_v6 = vpop.permute.xlu0 %1123  ;;  %v1104_v36 = vrot.slane %v1610_v8, %v1794_v46  ;;  %v1068_v33 = vmul.f32 %v1054_v37, %v2034_v25 }
 0x2d2   : > { %v1130_v7 = vsel %vm629_vm4, %v1124_v6, %v2019_v14  ;;  %v1131_v0 = vsel %vm629_vm4, %v2017_v9, %v1124_v6  ;;  %v1128_v15 = vpop.permute.xlu1 %1127  ;;  %1315 = vmatpush1.msra.mxu0 %v1185_v55  ;;  %1385 = vmatprep.subr.mxu1 %v1188_v5 }
 0x2d3   : > { %v1155_v16 = vmul.f32 %v1138_v59, %v1131_v0  ;;  %v1156_v30 = vmul.f32 %v1142_v63, %v1130_v7  ;;  %v1129_v32 = vsel %vm629_vm4, %v2019_v14, %v1128_v15  ;;  %v1132_v17 = vsel %vm629_vm4, %v1128_v15, %v2017_v9  ;;  %1386 = vmatpush1.msra.mxu1 %v1187_v60  ;;  %v1608_v9 = vld [vmem:[%s2188_s1 + $0x1] ss:$8 sm:$0xf] }
 0x2d4   : > { %v1157_v18 = vmul.f32 %v1146_v4, %v1129_v32  ;;  %v1158_v26 = vmul.f32 %v1150_v44, %v1132_v17  ;;  %v1016_v61 = vrot.slane %v1608_v9, %v1799_v49  ;;  %v1008_v10 = vrot.slane %v1608_v9, %v1785_v41 }
 0x2d5   : > { %1316 = vmatprep.subr.mxu0 %v1156_v30  ;;  %v1076_v21 = vpop.permute.xlu0 %1075  ;;  %v1020_v12 = vrot.slane %v1608_v9, %v1794_v46  ;;  %v1067_v59 = vmul.f32 %v1050_v53, %v2046_v27  ;;  %v1070_v63 = vmul.f32 %v1062_v47, %v2042_v24  ;;  %v1069_v4 = vmul.f32 %v1058_v38, %v2030_v19 }
 0x2d6   : > { %v1078_v23 = vpop.permute.xlu1 %1077  ;;  %1317 = vmatpush1.msra.mxu0 %v1155_v16  ;;  %1387 = vmatprep.subr.mxu1 %v1158_v26  ;;  %v1027_v24 = vmul.f32 %v1016_v61, %v2057_v43 }
 0x2d7   : > { %v1085_v14 = vsel %vm581_vm5, %v1076_v21, %v1078_v23  ;;  %1318 = vmatprep.subr.mxu0 %v1979_v57  ;;  %1388 = vmatpush1.msra.mxu1 %v1157_v18  ;;  %v1100_v57 = vrot.slane %v1610_v8, %v1799_v49  ;;  %v1028_v25 = vmul.f32 %v1020_v12, %v2069_v52 }
 0x2d8   : > { %v1110_v34 = vmul.f32 %v1096_v20, %v1085_v14  ;;  %1319 = vmatpush1.msra.mxu0 %v1959_v51  ;;  %1389 = vmatprep.subr.mxu1 %v1981_v58  ;;  %v961_v51 = vld [vmem:[%s2188_s1] ss:$8 sm:$0xf] }
 0x2d9   : > { %1390 = vmatpush1.msra.mxu1 %v1961_v31  ;;  %v1080_v39 = vpop.permute.xlu0 %1079  ;;  %v1012_v31 = vrot.slane %v1608_v9, %v1787_v42  ;;  %v970_v54 = vrot.slane %v961_v51, %v1787_v42  ;;  %v966_v55 = vrot.slane %v961_v51, %v1785_v41  ;;  %v978_v40 = vrot.slane %v961_v51, %v1794_v46 }
 0x2da   : > { %v1084_v58 = vsel %vm581_vm5, %v1078_v23, %v1080_v39  ;;  %v1082_v48 = vpop.permute.xlu1 %1081  ;;  %1320 = vmatprep.subr.mxu0 %v1110_v34  ;;  %v974_v60 = vrot.slane %v961_v51, %v1799_v49  ;;  %v1025_v42 = vmul.f32 %v1008_v10, %v2073_v13  ;;  %v948_v49 = vld [vmem:[%s2190_s3 + $0x8] sm:$0xff] }
 0x2db   : > { %v1083_v62 = vsel %vm581_vm5, %v1080_v39, %v1082_v48  ;;  %v1086_v11 = vsel %vm581_vm5, %v1082_v48, %v1076_v21  ;;  %v1111_v56 = vmul.f32 %v1100_v57, %v1084_v58  ;;  %v1026_v44 = vmul.f32 %v1012_v31, %v2061_v45 }
 0x2dc   : > { %v1109_v28 = vmul.f32 %v1092_v35, %v1086_v11  ;;  %v1112_v29 = vmul.f32 %v1104_v36, %v1083_v62  ;;  %v984_v46 = vmul.f32 %v970_v54, %v2088_v1  ;;  %v983_v19 = vmul.f32 %v966_v55, %v2100_v3 }
 0x2dd   : > { %v986_v27 = vmul.f32 %v978_v40, %v2096_v2  ;;  %v985_v45 = vmul.f32 %v974_v60, %v2084_v50 }
 0x2de   : > { %1321 = vmatpush1.msra.mxu0 %v1109_v28  ;;  %1391 = vmatprep.subr.mxu1 %v1112_v29 }
 0x2df   : > { %1322 = vmatprep.subr.mxu0 %v1068_v33  ;;  %1392 = vmatpush1.msra.mxu1 %v1111_v56 }
 0x2e0   : > { %1323 = vmatpush1.msra.mxu0 %v1067_v59  ;;  %1393 = vmatprep.subr.mxu1 %v1070_v63 }
 0x2e1   : > { %1324 = vmatprep.subr.mxu0 %v1026_v44  ;;  %1394 = vmatpush1.msra.mxu1 %v1069_v4 }
 0x2e2   : > { %1325 = vmatpush1.msra.mxu0 %v1025_v42  ;;  %1395 = vmatprep.subr.mxu1 %v1028_v25 }
 0x2e3   : > { %1326 = vmatprep.subr.mxu0 %v984_v46  ;;  %1396 = vmatpush1.msra.mxu1 %v1027_v24 }
 0x2e4   : > { %1327 = vmatpush1.msra.mxu0 %v983_v19  ;;  %1397 = vmatprep.subr.mxu1 %v986_v27 }
 0x2e5   : > { %1615 = vmatmul.mubr.msk.f32.vlgmr.msra.gmra.mxu0 %vm798_vm6, %v948_v49  ;;  %1398 = vmatpush1.msra.mxu1 %v985_v45 }
 0x2e6   : > { %1616 = vmatmul.mubr.msk.f32.vlgmr.msra.gmra.mxu1 %vm798_vm6, %v948_v49  ;;  %v1291_v52 = vpop.permute.xlu0 %1290 }
 0x2e7   : > { %v1464_v43 = vpop.permute.xlu1 %1463 }
 0x2e8   : > { %v1465_v1 = vrot.slane %v1464_v43, 7 }
 0x2eb   : > { %v1446_v15 = vpop.permute.xlu1 %1445  ;;  %v1454_v30 = vpop.permute.xlu0 %1453 }
 0x3a5   : > { %v1362_v13 = vpop.f32.mrf.mxu0 }
 0x3a6   : > { %v1363_v2 = vadd.f32 %v1362_v13, %v1291_v52  ;;  %v1433_v3 = vpop.f32.mrf.mxu1 }
 0x3a7   : > { %v1434_v5 = vadd.f32 %v1433_v3, %v1291_v52  ;;  %v1364_v6 = vpop.f32.mrf.mxu0 }
 0x3a8   : > { %v1438_v8 = vmax.f32 %v1363_v2, 0.0  ;;  %v1365_v7 = vadd.f32 %v1364_v6, %v1291_v52  ;;  %v1435_v50 = vpop.f32.mrf.mxu1 }
 0x3a9   : > { %v1440_v0 = vmax.f32 %v1434_v5, 0.0  ;;  %v1436_v16 = vadd.f32 %v1435_v50, %v1291_v52 }
 0x3aa   : > { %v1448_v32 = vmul.f32 %v1446_v15, %v1438_v8  ;;  %v1467_v17 = vmul.f32 %v1465_v1, %v1438_v8  ;;  %v1439_v18 = vmax.f32 %v1365_v7, 0.0 }
 0x3ab   : > { %v1469_v26 = vmul.f32 %v1465_v1, %v1440_v0  ;;  %v1450_v20 = vmul.f32 %v1446_v15, %v1440_v0  ;;  %v1441_v21 = vmax.f32 %v1436_v16, 0.0 }
 0x3ac   : > { %v1449_v22 = vmul.f32 %v1446_v15, %v1439_v18  ;;  %v1468_v23 = vmul.f32 %v1465_v1, %v1439_v18  ;;  %v1475_v14 = vrot.slane %v1467_v17, 1  ;;  %v1456_v9 = vadd.f32 %v1454_v30, %v1448_v32 }
 0x3ad   : > { %v1477_v34 = vrot.slane %v1469_v26, 1  ;;  %v1451_v35 = vmul.f32 %v1446_v15, %v1441_v21  ;;  %v1470_v36 = vmul.f32 %v1465_v1, %v1441_v21  ;;  %v1458_v37 = vadd.f32 %v1454_v30, %v1450_v20 }
 0x3ae   : > { %v1476_v57 = vrot.slane %v1468_v23, 1  ;;  %v1457_v39 = vadd.f32 %v1454_v30, %v1449_v22  ;;  %v1483_v38 = vadd.f32 %v1475_v14, %v1456_v9 }
 0x3af   : > { %v1478_v53 = vrot.slane %v1470_v36, 1  ;;  %v1459_v47 = vadd.f32 %v1454_v30, %v1451_v35  ;;  %v1485_v51 = vadd.f32 %v1477_v34, %v1458_v37 }
 0x3b0   : > { %v1484_v58 = vadd.f32 %v1476_v57, %v1457_v39  ;;  %v1490_v48 = vrot.slane %v1483_v38, %v1785_v41 }
 0x3b1   : > { %v1486_v31 = vadd.f32 %v1478_v53, %v1459_v47  ;;  %v1506_v61 = vrot.slane %v1485_v51, %v1785_v41 }
 0x3b2   : > { %v1494_v62 = vrot.slane %v1484_v58, %v1785_v41  ;;  %1495 = vst [vmem:[%s231_s6] sm:$0xff] %v1490_v48  ;;  %1497 = vst [vmem:[%s231_s6 + $0x10] sm:$0xff] %v1490_v48 }
 0x3b3   : > { %1499 = vst [vmem:[%s231_s6 + $0x20] sm:$0xff] %v1490_v48  ;;  %1501 = vst [vmem:[%s231_s6 + $0x30] sm:$0xff] %v1490_v48  ;;  %v1510_v11 = vrot.slane %v1486_v31, %v1785_v41 }
 0x3b4   : > { %1617 = vst [vmem:[%s231_s6 + $0x40] sm:$0xff] %v1506_v61  ;;  %1619 = vst [vmem:[%s231_s6 + $0x50] sm:$0xff] %v1506_v61 }
 0x3b5   : > { %1621 = vst [vmem:[%s231_s6 + $0x60] sm:$0xff] %v1506_v61  ;;  %1623 = vst [vmem:[%s231_s6 + $0x70] sm:$0xff] %v1506_v61 }
 0x3b6   : > { %1496 = vst [vmem:[%s231_s6 + $0x8] sm:$0xff] %v1494_v62  ;;  %1498 = vst [vmem:[%s231_s6 + $0x18] sm:$0xff] %v1494_v62 }
 0x3b7   : > { %1500 = vst [vmem:[%s231_s6 + $0x28] sm:$0xff] %v1494_v62  ;;  %1502 = vst [vmem:[%s231_s6 + $0x38] sm:$0xff] %v1494_v62 }
 0x3b8   : > { %1618 = vst [vmem:[%s231_s6 + $0x48] sm:$0xff] %v1510_v11  ;;  %1620 = vst [vmem:[%s231_s6 + $0x58] sm:$0xff] %v1510_v11 }
 0x3b9   : > { %1622 = vst [vmem:[%s231_s6 + $0x68] sm:$0xff] %v1510_v11  ;;  %1624 = vst [vmem:[%s231_s6 + $0x78] sm:$0xff] %v1510_v11 }
 0x3ba PF: > { %s15_s18 = sadd.s32 1, %s1660_s18  }
 0x3bb   : > { %p12_p4 = scmp.ge.s32.totalorder %s15_s18, 4  }
 0x3bd   :  { %14 = sbr.rel (!%p12_p4) target bundleno = 1 (0x1), region = 79 }

</bundles_post_ra>
